<compile_context>
chip_gen: v7x
topology: tpu7x:2x2x1
jax: 0.10.0
libtpu: 0.0.40
codegen_flags: <defaults>
</compile_context>

<pallas_src>
import functools

import jax
import jax.numpy as jnp
from jax.experimental import pallas as pl
from jax.experimental.pallas import tpu as pltpu

_LANE = 128
_SUBLANE = 8
# Largest batch handled as one grid step.  Working set at 8192 rows:
# x tile 512 KiB + out tile 4 MiB (x2 for double buffering) + ~20 KiB weights
# -> well under the 32 MiB scoped VMEM limit on all generations.
_MAX_SINGLE_TILE = 8192


def _round_up(x: int, m: int) -> int:
    return ((x + m - 1) // m) * m


def _mlp_kernel(x_ref, w1_ref, b1_ref, w2_ref, b2_ref, o_ref):
    # hidden = relu(x @ W1 + b1) -- stays in vregs, never written to VMEM.
    h = jnp.dot(x_ref[...], w1_ref[...], preferred_element_type=jnp.float32)
    h = jnp.maximum(h + b1_ref[...], 0.0)
    # out = h @ W2 + b2 -- single lane-dense store of the result tile.
    y = jnp.dot(h, w2_ref[...], preferred_element_type=jnp.float32)
    o_ref[...] = (y + b2_ref[...]).astype(o_ref.dtype)


@functools.partial(jax.jit, static_argnames=("out_size", "tile_m"))
def linear_qnet_forward(x, w1, b1, w2p, b2p, *, out_size, tile_m=4096):
    """LinearQNet forward: relu(x @ W1 + b1) @ W2 + b2.

    x   : (B, in)        float32
    w1  : (in, hid)      float32  (pre-transposed vs. torch's (hid, in))
    b1  : (1, hid)       float32
    w2p : (hid, out_p)   float32  -- out-features pre-padded to a 128 multiple
    b2p : (1, out_p)     float32  -- pre-padded to match
    out_size : true (unpadded) number of output features (static)
    Returns (B, out_size) float32.
    """
    B, in_size = x.shape
    hid = w1.shape[1]
    out_p = w2p.shape[1]
    assert out_p % _LANE == 0 and b2p.shape == (1, out_p)

    if B <= _MAX_SINGLE_TILE:
        # Single grid step: block shapes equal the full array dims, so the
        # (8,128) divisibility rule is satisfied without any batch padding
        # and there is zero per-step pipeline overhead.
        tm, b_pad, xp = B, B, x
    else:
        # Large-B path: big batch tiles, even tile count for v7x megacore.
        tm_target = max(_SUBLANE, min(tile_m, _MAX_SINGLE_TILE))
        n_tiles = max(2, 2 * (-(-B // (2 * tm_target))))      # even tile count
        tm = _round_up(-(-B // n_tiles), _SUBLANE)
        b_pad = n_tiles * tm
        xp = jnp.pad(x, ((0, b_pad - B), (0, 0)))

    grid = (b_pad // tm,)

    cost = pl.CostEstimate(
        flops=2 * b_pad * (in_size * hid + hid * out_p),
        transcendentals=0,
        bytes_accessed=4 * (b_pad * in_size + in_size * hid + hid
                            + hid * out_p + out_p + b_pad * out_p),
    )

    out = pl.pallas_call(
        _mlp_kernel,
        out_shape=jax.ShapeDtypeStruct((b_pad, out_p), x.dtype),
        grid_spec=pl.GridSpec(
            grid=grid,
            in_specs=[
                pl.BlockSpec((tm, in_size), lambda i: (i, 0)),   # x: batch-tiled
                pl.BlockSpec((in_size, hid), lambda i: (0, 0)),  # W1: resident
                pl.BlockSpec((1, hid), lambda i: (0, 0)),        # b1: resident
                pl.BlockSpec((hid, out_p), lambda i: (0, 0)),    # W2: resident
                pl.BlockSpec((1, out_p), lambda i: (0, 0)),      # b2: resident
            ],
            out_specs=pl.BlockSpec((tm, out_p), lambda i: (i, 0)),
        ),
        compiler_params=pltpu.CompilerParams(
            dimension_semantics=("parallel",),      # megacore shard on v7x
            vmem_limit_bytes=32 * 1024 * 1024,      # v7x scoped default
        ),
        cost_estimate=cost,
    )(xp, w1, b1, w2p, b2p)

    # Strip batch / lane padding outside the kernel (cheap XLA slice; a no-op
    # on the batch axis in the single-step path).
    return out[:B, :out_size]


def init_params(key, input_size, hidden_size, output_size):
    """PyTorch-nn.Linear-style init (uniform +-1/sqrt(fan_in)).

    Returns (w1, b1, w2p, b2p) where w2p/b2p already carry the one-time
    zero-padding of the out-feature axis up to a multiple of 128 so the
    jitted forward never pads on the hot path.
    """
    k1, k2, k3, k4 = jax.random.split(key, 4)
    bound1 = 1.0 / (input_size ** 0.5)
    bound2 = 1.0 / (hidden_size ** 0.5)
    # stored already transposed: (in_features, out_features)
    w1 = jax.random.uniform(k1, (input_size, hidden_size), jnp.float32, -bound1, bound1)
    b1 = jax.random.uniform(k2, (1, hidden_size), jnp.float32, -bound1, bound1)
    w2 = jax.random.uniform(k3, (hidden_size, output_size), jnp.float32, -bound2, bound2)
    b2 = jax.random.uniform(k4, (1, output_size), jnp.float32, -bound2, bound2)

    out_p = _round_up(max(output_size, _LANE), _LANE)
    w2p = jnp.pad(w2, ((0, 0), (0, out_p - output_size)))
    b2p = jnp.pad(b2, ((0, 0), (0, out_p - output_size)))
    return w1, b1, w2p, b2p


if __name__ == "__main__":
    # Small shapes consistent with LinearQNet (snake-game style Q-net).
    # batch=200 is not a multiple of 8/128 -> exercises the full-extent
    # single-step path (no padding, no grid overhead).
    batch, input_size, hidden_size, output_size = 200, 16, 32, 4

    key = jax.random.PRNGKey(0)
    kx, kp = jax.random.split(key)
    x = jax.random.normal(kx, (batch, input_size), jnp.float32)
    w1, b1, w2p, b2p = init_params(kp, input_size, hidden_size, output_size)

    out = linear_qnet_forward(x, w1, b1, w2p, b2p, out_size=output_size)
    out = jax.block_until_ready(out)

    # reference check in plain JAX (padded columns of W2/b2 are exact zeros,
    # so slicing them recovers the original weights).
    w2 = w2p[:, :output_size]
    b2 = b2p[:, :output_size]
    ref = jnp.maximum(x @ w1 + b1, 0.0) @ w2 + b2
    assert out.shape == (batch, output_size)
    assert jnp.allclose(out, ref, atol=1e-5, rtol=1e-5)

    print("KERNEL_OK")
</pallas_src>

<mosaic_0001>
module attributes {stable_mosaic.version = 11 : i64} {
  func.func @_mlp_kernel(%arg0: i32, %arg1: memref<200x16xf32, #tpu.memory_space<vmem>>, %arg2: memref<16x32xf32, #tpu.memory_space<vmem>>, %arg3: memref<1x32xf32, #tpu.memory_space<vmem>>, %arg4: memref<32x128xf32, #tpu.memory_space<vmem>>, %arg5: memref<1x128xf32, #tpu.memory_space<vmem>>, %arg6: memref<200x128xf32, #tpu.memory_space<vmem>>) attributes {dimension_semantics = [#tpu.dimension_semantics<parallel>], iteration_bounds = array<i64: 1>, scalar_prefetch = 0 : i64, scratch_operands = 0 : i64, tpu.core_type = #tpu.core_type<tc>, window_params = [{transform_indices = @transform_0, window_bounds = array<i64: 200, 16>}, {pipeline_mode = #tpu.pipeline_mode<synchronous>, transform_indices = @transform_1, window_bounds = array<i64: 16, 32>}, {pipeline_mode = #tpu.pipeline_mode<synchronous>, transform_indices = @transform_2, window_bounds = array<i64: 1, 32>}, {pipeline_mode = #tpu.pipeline_mode<synchronous>, transform_indices = @transform_3, window_bounds = array<i64: 32, 128>}, {pipeline_mode = #tpu.pipeline_mode<synchronous>, transform_indices = @transform_4, window_bounds = array<i64: 1, 128>}, {transform_indices = @transform_5, window_bounds = array<i64: 200, 128>}]} {
    %c0 = arith.constant 0 : index
    %c0_0 = arith.constant 0 : index
    %0 = vector.load %arg1[%c0, %c0_0] : memref<200x16xf32, #tpu.memory_space<vmem>>, vector<200x16xf32>
    %c0_1 = arith.constant 0 : index
    %c0_2 = arith.constant 0 : index
    %1 = vector.load %arg2[%c0_1, %c0_2] : memref<16x32xf32, #tpu.memory_space<vmem>>, vector<16x32xf32>
    %cst = arith.constant dense<0.000000e+00> : vector<200x32xf32>
    %2 = tpu.matmul %0, %1, %cst {dimension_numbers = #tpu.dot_dimension_numbers<[1], [0], [0], [1], [0, 0, 1, 1], [], []>} : vector<200x16xf32>, vector<16x32xf32>, vector<200x32xf32> -> vector<200x32xf32>
    %c0_3 = arith.constant 0 : index
    %c0_4 = arith.constant 0 : index
    %3 = vector.load %arg3[%c0_3, %c0_4] : memref<1x32xf32, #tpu.memory_space<vmem>>, vector<1x32xf32>
    %4 = vector.broadcast %3 : vector<1x32xf32> to vector<200x32xf32>
    %5 = arith.addf %2, %4 : vector<200x32xf32>
    %cst_5 = arith.constant 0.000000e+00 : f32
    %6 = vector.broadcast %cst_5 : f32 to vector<200x32xf32>
    %7 = arith.maximumf %5, %6 : vector<200x32xf32>
    %c0_6 = arith.constant 0 : index
    %c0_7 = arith.constant 0 : index
    %8 = vector.load %arg4[%c0_6, %c0_7] : memref<32x128xf32, #tpu.memory_space<vmem>>, vector<32x128xf32>
    %cst_8 = arith.constant dense<0.000000e+00> : vector<200x128xf32>
    %9 = tpu.matmul %7, %8, %cst_8 {dimension_numbers = #tpu.dot_dimension_numbers<[1], [0], [0], [1], [0, 0, 1, 1], [], []>} : vector<200x32xf32>, vector<32x128xf32>, vector<200x128xf32> -> vector<200x128xf32>
    %c0_9 = arith.constant 0 : index
    %c0_10 = arith.constant 0 : index
    %10 = vector.load %arg5[%c0_9, %c0_10] : memref<1x128xf32, #tpu.memory_space<vmem>>, vector<1x128xf32>
    %11 = vector.broadcast %10 : vector<1x128xf32> to vector<200x128xf32>
    %12 = arith.addf %9, %11 : vector<200x128xf32>
    %c0_11 = arith.constant 0 : index
    %c0_12 = arith.constant 0 : index
    %13 = vector.load %arg6[%c0_11, %c0_12] : memref<200x128xf32, #tpu.memory_space<vmem>>, vector<200x128xf32>
    tpu.vector_store %arg6[%c0_11, %c0_12], %12 {strides = array<i32>} : memref<200x128xf32, #tpu.memory_space<vmem>>, vector<200x128xf32>,
    return
  }
  func.func @transform_0(%arg0: i32) -> (i32, i32) {
    %c0_i32 = arith.constant 0 : i32
    %c0_i32_0 = arith.constant 0 : i32
    return %arg0, %c0_i32 : i32, i32
  }
  func.func @transform_1(%arg0: i32) -> (i32, i32) {
    %c0_i32 = arith.constant 0 : i32
    %c0_i32_0 = arith.constant 0 : i32
    %c0_i32_1 = arith.constant 0 : i32
    return %c0_i32, %c0_i32_0 : i32, i32
  }
  func.func @transform_2(%arg0: i32) -> (i32, i32) {
    %c0_i32 = arith.constant 0 : i32
    %c0_i32_0 = arith.constant 0 : i32
    %c0_i32_1 = arith.constant 0 : i32
    return %c0_i32, %c0_i32_0 : i32, i32
  }
  func.func @transform_3(%arg0: i32) -> (i32, i32) {
    %c0_i32 = arith.constant 0 : i32
    %c0_i32_0 = arith.constant 0 : i32
    %c0_i32_1 = arith.constant 0 : i32
    return %c0_i32, %c0_i32_0 : i32, i32
  }
  func.func @transform_4(%arg0: i32) -> (i32, i32) {
    %c0_i32 = arith.constant 0 : i32
    %c0_i32_0 = arith.constant 0 : i32
    %c0_i32_1 = arith.constant 0 : i32
    return %c0_i32, %c0_i32_0 : i32, i32
  }
  func.func @transform_5(%arg0: i32) -> (i32, i32) {
    %c0_i32 = arith.constant 0 : i32
    %c0_i32_0 = arith.constant 0 : i32
    return %arg0, %c0_i32 : i32, i32
  }
}

</mosaic_0001>

<bundles_post_ra>
// kernel: linear_qnet_forward.1
= control target key start
LH: loop header
LB: loop body
LE: loop exit
PB: predicated region body
PF: predicated region fallthrough
CT: control target
= control target key end

     0   :  { %v933_v0 = vmov 0.0|0.0   ;;  %vm934_vm0 = vmmov 0   ;;  %v935_v3 = vmov 0.0   ;;  %vm54_vm1 = vcmask 130048   ;;  %s1344_s1 = inlined_call_operand.vmem [shape: f32[16,32], index: 1, kind: input, shape index: {}]   ;;  %s1345_s0 = inlined_call_operand.vmem [shape: f32[200,16], index: 0, kind: input, shape index: {}]   ;;  %s1346_s3 = inlined_call_operand.vmem [shape: f32[32,128], index: 3, kind: input, shape index: {}]   ;;  %s1347_s2 = inlined_call_operand.vmem [shape: f32[1,32], index: 2, kind: input, shape index: {}]   ;;  %s1348_s4 = inlined_call_operand.vmem [shape: f32[1,128], index: 4, kind: input, shape index: {}]   ;;  %s1349_s5 = inlined_call_operand.vmem [shape: f32[200,128], index: 5, kind: output, shape index: {}]  }
   0x1   :  { %921 = vmatprep.subr.bf16.mxu0 %v933_v0  ;;  %v45_v1 = vld [vmem:[%s1344_s1] sm:$0xff]  ;;  %v46_v2 = vld [vmem:[%s1344_s1 + $0x8] sm:$0xff]  ;;  %763 = vmatprep.mubr.msk.f32.mxu0 %vm934_vm0, %v935_v3  ;;  %v22_v10 = vld [vmem:[%s1345_s0 + $0x10] sm:$0xff]  ;;  %vm356_vm2 = vcmask 261120  }
   0x2   :  { %v922_v4 = vpack.c.bf16 %v46_v2, %v45_v1  ;;  %924 = vmatprep.subr.bf16.mxu1 %v933_v0  ;;  %846 = vmatprep.mubr.msk.f32.mxu1 %vm934_vm0, %v935_v3  ;;  %v20_v5 = vld [vmem:[%s1345_s0] sm:$0xff]  ;;  %v21_v6 = vld [vmem:[%s1345_s0 + $0x8] sm:$0xff]  ;;  %v23_v11 = vld [vmem:[%s1345_s0 + $0x18] sm:$0xff] }
   0x3   :  { %v345_v7 = vld [vmem:[%s1346_s3] sm:$0xff]  ;;  %v346_v8 = vld [vmem:[%s1346_s3 + $0x8] sm:$0xff]  ;;  %v26_v14 = vld [vmem:[%s1345_s0 + $0x30] sm:$0xff] }
   0x4   :  { %923 = vmatpush3.bf16.msra.mxu0 %v922_v4  ;;  %v925_v9 = vpack.c.bf16 %v346_v8, %v345_v7  ;;  %v24_v12 = vld [vmem:[%s1345_s0 + $0x20] sm:$0xff]  ;;  %v25_v13 = vld [vmem:[%s1345_s0 + $0x28] sm:$0xff]  ;;  %v27_v15 = vld [vmem:[%s1345_s0 + $0x38] sm:$0xff] }
   0x5   :  { %v28_v16 = vld [vmem:[%s1345_s0 + $0x40] sm:$0xff]  ;;  %v29_v17 = vld [vmem:[%s1345_s0 + $0x48] sm:$0xff]  ;;  %v30_v18 = vld [vmem:[%s1345_s0 + $0x50] sm:$0xff] }
   0x6   :  { %926 = vmatpush3.bf16.msra.mxu1 %v925_v9  ;;  %v31_v19 = vld [vmem:[%s1345_s0 + $0x58] sm:$0xff]  ;;  %v32_v20 = vld [vmem:[%s1345_s0 + $0x60] sm:$0xff]  ;;  %v33_v21 = vld [vmem:[%s1345_s0 + $0x68] sm:$0xff] }
   0x7   :  { %764 = vmatmul.mubr.msk.f32.vlgmr.msra.gmra.mrb[0].mxu0 %vm54_vm1, %v20_v5  ;;  %927 = vmatprep.subr.bf16.mxu1 %v933_v0  ;;  %v34_v22 = vld [vmem:[%s1345_s0 + $0x70] sm:$0xff]  ;;  %v35_v23 = vld [vmem:[%s1345_s0 + $0x78] sm:$0xff]  ;;  %v36_v24 = vld [vmem:[%s1345_s0 + $0x80] sm:$0xff] }
   0x8   :  { %766 = vmatprep.mubr.msk.f32.mxu0 %vm934_vm0, %v935_v3  ;;  %v37_v25 = vld [vmem:[%s1345_s0 + $0x88] sm:$0xff]  ;;  %v38_v26 = vld [vmem:[%s1345_s0 + $0x90] sm:$0xff]  ;;  %v39_v27 = vld [vmem:[%s1345_s0 + $0x98] sm:$0xff] }
   0x9   :  { %v40_v28 = vld [vmem:[%s1345_s0 + $0xa0] sm:$0xff]  ;;  %v41_v29 = vld [vmem:[%s1345_s0 + $0xa8] sm:$0xff]  ;;  %v347_v30 = vld [vmem:[%s1346_s3 + $0x10] sm:$0xff] }
   0xa   :  { %v348_v31 = vld [vmem:[%s1346_s3 + $0x18] sm:$0xff]  ;;  %v42_v33 = vld [vmem:[%s1345_s0 + $0xb0] sm:$0xff]  ;;  %v44_v35 = vld [vmem:[%s1345_s0 + $0xc0] sm:$0xff] }
   0xb   :  { %767 = vmatmul.mubr.msk.f32.gmra.mrb[2].mxu0 %vm54_vm1, %v21_v6  ;;  %v928_v32 = vpack.c.bf16 %v348_v31, %v347_v30  ;;  %v43_v34 = vld [vmem:[%s1345_s0 + $0xb8] sm:$0xff]  ;;  %v1139_v36 = vld [vmem:[%s1347_s2] ss:$0 sm:$0xff] }
   0xc   :  { %769 = vmatprep.mubr.msk.f32.mxu0 %vm934_vm0, %v935_v3 }
   0xd   :  { %929 = vmatpush3.bf16.msra.mxu1 %v928_v32 }
   0xf   :  { %770 = vmatmul.mubr.msk.f32.gmra.mrb[4].mxu0 %vm54_vm1, %v22_v10 }
  0x10   :  { %772 = vmatprep.mubr.msk.f32.mxu0 %vm934_vm0, %v935_v3 }
  0x13   :  { %773 = vmatmul.mubr.msk.f32.gmra.mrb[6].mxu0 %vm54_vm1, %v23_v11 }
  0x14   :  { %775 = vmatprep.mubr.msk.f32.mxu0 %vm934_vm0, %v935_v3 }
  0x17   :  { %776 = vmatmul.mubr.msk.f32.gmra.mrb[8].mxu0 %vm54_vm1, %v24_v12 }
  0x18   :  { %778 = vmatprep.mubr.msk.f32.mxu0 %vm934_vm0, %v935_v3 }
  0x1b   :  { %779 = vmatmul.mubr.msk.f32.gmra.mrb[10].mxu0 %vm54_vm1, %v25_v13 }
  0x1c   :  { %781 = vmatprep.mubr.msk.f32.mxu0 %vm934_vm0, %v935_v3 }
  0x1f   :  { %782 = vmatmul.mubr.msk.f32.gmra.mrb[12].mxu0 %vm54_vm1, %v26_v14 }
  0x20   :  { %784 = vmatprep.mubr.msk.f32.mxu0 %vm934_vm0, %v935_v3 }
  0x23   :  { %785 = vmatmul.mubr.msk.f32.gmra.mrb[14].mxu0 %vm54_vm1, %v27_v15 }
  0x24   :  { %787 = vmatprep.mubr.msk.f32.mxu0 %vm934_vm0, %v935_v3 }
  0x27   :  { %788 = vmatmul.mubr.msk.f32.gmra.mrb[16].mxu0 %vm54_vm1, %v28_v16 }
  0x28   :  { %790 = vmatprep.mubr.msk.f32.mxu0 %vm934_vm0, %v935_v3 }
  0x2b   :  { %791 = vmatmul.mubr.msk.f32.gmra.mrb[18].mxu0 %vm54_vm1, %v29_v17 }
  0x2c   :  { %793 = vmatprep.mubr.msk.f32.mxu0 %vm934_vm0, %v935_v3 }
  0x2f   :  { %794 = vmatmul.mubr.msk.f32.gmra.mrb[20].mxu0 %vm54_vm1, %v30_v18 }
  0x30   :  { %796 = vmatprep.mubr.msk.f32.mxu0 %vm934_vm0, %v935_v3 }
  0x33   :  { %797 = vmatmul.mubr.msk.f32.gmra.mrb[22].mxu0 %vm54_vm1, %v31_v19 }
  0x34   :  { %799 = vmatprep.mubr.msk.f32.mxu0 %vm934_vm0, %v935_v3 }
  0x37   :  { %800 = vmatmul.mubr.msk.f32.gmra.mrb[24].mxu0 %vm54_vm1, %v32_v20 }
  0x38   :  { %802 = vmatprep.mubr.msk.f32.mxu0 %vm934_vm0, %v935_v3 }
  0x3b   :  { %803 = vmatmul.mubr.msk.f32.gmra.mrb[26].mxu0 %vm54_vm1, %v33_v21 }
  0x3c   :  { %805 = vmatprep.mubr.msk.f32.mxu0 %vm934_vm0, %v935_v3 }
  0x3f   :  { %806 = vmatmul.mubr.msk.f32.gmra.mrb[28].mxu0 %vm54_vm1, %v34_v22 }
  0x40   :  { %808 = vmatprep.mubr.msk.f32.mxu0 %vm934_vm0, %v935_v3 }
  0x43   :  { %809 = vmatmul.mubr.msk.f32.gmra.mrb[30].mxu0 %vm54_vm1, %v35_v23 }
  0x44   :  { %811 = vmatprep.mubr.msk.f32.mxu0 %vm934_vm0, %v935_v3 }
  0x47   :  { %812 = vmatmul.mubr.msk.f32.gmra.mrb[32].mxu0 %vm54_vm1, %v36_v24 }
  0x48   :  { %814 = vmatprep.mubr.msk.f32.mxu0 %vm934_vm0, %v935_v3 }
  0x4b   :  { %815 = vmatmul.mubr.msk.f32.gmra.mrb[34].mxu0 %vm54_vm1, %v37_v25 }
  0x4c   :  { %817 = vmatprep.mubr.msk.f32.mxu0 %vm934_vm0, %v935_v3 }
  0x4f   :  { %818 = vmatmul.mubr.msk.f32.gmra.mrb[36].mxu0 %vm54_vm1, %v38_v26 }
  0x50   :  { %820 = vmatprep.mubr.msk.f32.mxu0 %vm934_vm0, %v935_v3 }
  0x53   :  { %821 = vmatmul.mubr.msk.f32.gmra.mrb[38].mxu0 %vm54_vm1, %v39_v27 }
  0x54   :  { %823 = vmatprep.mubr.msk.f32.mxu0 %vm934_vm0, %v935_v3 }
  0x57   :  { %824 = vmatmul.mubr.msk.f32.gmra.mrb[40].mxu0 %vm54_vm1, %v40_v28 }
  0x58   :  { %826 = vmatprep.mubr.msk.f32.mxu0 %vm934_vm0, %v935_v3 }
  0x5b   :  { %827 = vmatmul.mubr.msk.f32.gmra.mrb[42].mxu0 %vm54_vm1, %v41_v29 }
  0x5c   :  { %829 = vmatprep.mubr.msk.f32.mxu0 %vm934_vm0, %v935_v3 }
  0x5f   :  { %830 = vmatmul.mubr.msk.f32.gmra.mrb[44].mxu0 %vm54_vm1, %v42_v33 }
  0x60   :  { %832 = vmatprep.mubr.msk.f32.mxu0 %vm934_vm0, %v935_v3 }
  0x63   :  { %833 = vmatmul.mubr.msk.f32.gmra.mrb[46].mxu0 %vm54_vm1, %v43_v34 }
  0x64   :  { %835 = vmatprep.mubr.msk.f32.mxu0 %vm934_vm0, %v935_v3 }
  0x67   :  { %836 = vmatmul.mubr.msk.f32.gmra.mrb[48].mxu0 %vm54_vm1, %v44_v35 }
  0xda   :  { %v196_v37 = vpop.f32.mrb[0].mxu0 }
  0xdb   :  { %v197_v38 = vadd.f32 %v1139_v36, %v196_v37  ;;  %v765_v39 = vpop.f32.mrb[1].mxu0 }
  0xdd   :  { %v320_v40 = vmax.f32 %v197_v38, 0.0 }
  0xde   :  { %v201_v41 = vpop.f32.mrb[2].mxu0 }
  0xdf   :  { %v202_v42 = vadd.f32 %v1139_v36, %v201_v41  ;;  %v768_v43 = vpop.f32.mrb[3].mxu0  ;;  %847 = vmatmul.mubr.msk.f32.vlgmr.msra.gmra.mrb[0].mxu1 %vm356_vm2, %v320_v40 }
  0xe0   :  { %849 = vmatprep.mubr.msk.f32.mxu1 %vm934_vm0, %v935_v3 }
  0xe1   :  { %v321_v44 = vmax.f32 %v202_v42, 0.0 }
  0xe2   :  { %v206_v45 = vpop.f32.mrb[4].mxu0 }
  0xe3   :  { %v207_v46 = vadd.f32 %v1139_v36, %v206_v45  ;;  %v771_v47 = vpop.f32.mrb[5].mxu0  ;;  %850 = vmatmul.mubr.msk.f32.gmra.mrb[2].mxu1 %vm356_vm2, %v321_v44 }
  0xe4   :  { %852 = vmatprep.mubr.msk.f32.mxu1 %vm934_vm0, %v935_v3 }
  0xe5   :  { %v322_v48 = vmax.f32 %v207_v46, 0.0 }
  0xe6   :  { %v211_v49 = vpop.f32.mrb[6].mxu0 }
  0xe7   :  { %v212_v50 = vadd.f32 %v1139_v36, %v211_v49  ;;  %v774_v51 = vpop.f32.mrb[7].mxu0  ;;  %853 = vmatmul.mubr.msk.f32.gmra.mrb[4].mxu1 %vm356_vm2, %v322_v48 }
  0xe8   :  { %855 = vmatprep.mubr.msk.f32.mxu1 %vm934_vm0, %v935_v3 }
  0xe9   :  { %v323_v52 = vmax.f32 %v212_v50, 0.0 }
  0xea   :  { %v216_v53 = vpop.f32.mrb[8].mxu0 }
  0xeb   :  { %v217_v54 = vadd.f32 %v1139_v36, %v216_v53  ;;  %v777_v55 = vpop.f32.mrb[9].mxu0  ;;  %856 = vmatmul.mubr.msk.f32.gmra.mrb[6].mxu1 %vm356_vm2, %v323_v52 }
  0xec   :  { %858 = vmatprep.mubr.msk.f32.mxu1 %vm934_vm0, %v935_v3 }
  0xed   :  { %v324_v56 = vmax.f32 %v217_v54, 0.0 }
  0xee   :  { %v221_v57 = vpop.f32.mrb[10].mxu0 }
  0xef   :  { %v222_v58 = vadd.f32 %v1139_v36, %v221_v57  ;;  %v780_v59 = vpop.f32.mrb[11].mxu0  ;;  %859 = vmatmul.mubr.msk.f32.gmra.mrb[8].mxu1 %vm356_vm2, %v324_v56 }
  0xf0   :  { %861 = vmatprep.mubr.msk.f32.mxu1 %vm934_vm0, %v935_v3 }
  0xf1   :  { %v325_v60 = vmax.f32 %v222_v58, 0.0 }
  0xf2   :  { %v226_v61 = vpop.f32.mrb[12].mxu0 }
  0xf3   :  { %v227_v62 = vadd.f32 %v1139_v36, %v226_v61  ;;  %v783_v63 = vpop.f32.mrb[13].mxu0  ;;  %862 = vmatmul.mubr.msk.f32.gmra.mrb[10].mxu1 %vm356_vm2, %v325_v60 }
  0xf4   :  { %864 = vmatprep.mubr.msk.f32.mxu1 %vm934_vm0, %v935_v3 }
  0xf5   :  { %v326_v0 = vmax.f32 %v227_v62, 0.0 }
  0xf6   :  { %v231_v1 = vpop.f32.mrb[14].mxu0 }
  0xf7   :  { %v232_v2 = vadd.f32 %v1139_v36, %v231_v1  ;;  %v786_v4 = vpop.f32.mrb[15].mxu0  ;;  %865 = vmatmul.mubr.msk.f32.gmra.mrb[12].mxu1 %vm356_vm2, %v326_v0 }
  0xf8   :  { %867 = vmatprep.mubr.msk.f32.mxu1 %vm934_vm0, %v935_v3 }
  0xf9   :  { %v327_v5 = vmax.f32 %v232_v2, 0.0 }
  0xfa   :  { %v236_v6 = vpop.f32.mrb[16].mxu0 }
  0xfb   :  { %v237_v7 = vadd.f32 %v1139_v36, %v236_v6  ;;  %v789_v8 = vpop.f32.mrb[17].mxu0  ;;  %868 = vmatmul.mubr.msk.f32.gmra.mrb[14].mxu1 %vm356_vm2, %v327_v5 }
  0xfc   :  { %870 = vmatprep.mubr.msk.f32.mxu1 %vm934_vm0, %v935_v3 }
  0xfd   :  { %v328_v9 = vmax.f32 %v237_v7, 0.0 }
  0xfe   :  { %v241_v10 = vpop.f32.mrb[18].mxu0 }
  0xff   :  { %v242_v11 = vadd.f32 %v1139_v36, %v241_v10  ;;  %v792_v12 = vpop.f32.mrb[19].mxu0  ;;  %871 = vmatmul.mubr.msk.f32.gmra.mrb[16].mxu1 %vm356_vm2, %v328_v9 }
 0x100   :  { %873 = vmatprep.mubr.msk.f32.mxu1 %vm934_vm0, %v935_v3  ;;  %v1242_v12 = vld [vmem:[%s1348_s4] ss:$0 sm:$0xff] }
 0x101   :  { %v329_v13 = vmax.f32 %v242_v11, 0.0 }
 0x102   :  { %v246_v14 = vpop.f32.mrb[20].mxu0 }
 0x103   :  { %v247_v15 = vadd.f32 %v1139_v36, %v246_v14  ;;  %v795_v16 = vpop.f32.mrb[21].mxu0  ;;  %874 = vmatmul.mubr.msk.f32.gmra.mrb[18].mxu1 %vm356_vm2, %v329_v13 }
 0x104   :  { %876 = vmatprep.mubr.msk.f32.mxu1 %vm934_vm0, %v935_v3 }
 0x105   :  { %v330_v17 = vmax.f32 %v247_v15, 0.0 }
 0x106   :  { %v251_v18 = vpop.f32.mrb[22].mxu0 }
 0x107   :  { %v252_v19 = vadd.f32 %v1139_v36, %v251_v18  ;;  %v798_v20 = vpop.f32.mrb[23].mxu0  ;;  %877 = vmatmul.mubr.msk.f32.gmra.mrb[20].mxu1 %vm356_vm2, %v330_v17 }
 0x108   :  { %879 = vmatprep.mubr.msk.f32.mxu1 %vm934_vm0, %v935_v3 }
 0x109   :  { %v331_v21 = vmax.f32 %v252_v19, 0.0 }
 0x10a   :  { %v256_v22 = vpop.f32.mrb[24].mxu0 }
 0x10b   :  { %v257_v23 = vadd.f32 %v1139_v36, %v256_v22  ;;  %v801_v24 = vpop.f32.mrb[25].mxu0  ;;  %880 = vmatmul.mubr.msk.f32.gmra.mrb[22].mxu1 %vm356_vm2, %v331_v21 }
 0x10c   :  { %882 = vmatprep.mubr.msk.f32.mxu1 %vm934_vm0, %v935_v3 }
 0x10d   :  { %v332_v25 = vmax.f32 %v257_v23, 0.0 }
 0x10e   :  { %v261_v26 = vpop.f32.mrb[26].mxu0 }
 0x10f   :  { %v262_v27 = vadd.f32 %v1139_v36, %v261_v26  ;;  %v804_v28 = vpop.f32.mrb[27].mxu0  ;;  %883 = vmatmul.mubr.msk.f32.gmra.mrb[24].mxu1 %vm356_vm2, %v332_v25 }
 0x110   :  { %885 = vmatprep.mubr.msk.f32.mxu1 %vm934_vm0, %v935_v3 }
 0x111   :  { %v333_v29 = vmax.f32 %v262_v27, 0.0 }
 0x112   :  { %v266_v30 = vpop.f32.mrb[28].mxu0 }
 0x113   :  { %v267_v31 = vadd.f32 %v1139_v36, %v266_v30  ;;  %v807_v32 = vpop.f32.mrb[29].mxu0  ;;  %886 = vmatmul.mubr.msk.f32.gmra.mrb[26].mxu1 %vm356_vm2, %v333_v29 }
 0x114   :  { %888 = vmatprep.mubr.msk.f32.mxu1 %vm934_vm0, %v935_v3 }
 0x115   :  { %v334_v33 = vmax.f32 %v267_v31, 0.0 }
 0x116   :  { %v271_v34 = vpop.f32.mrb[30].mxu0 }
 0x117   :  { %v272_v35 = vadd.f32 %v1139_v36, %v271_v34  ;;  %v810_v37 = vpop.f32.mrb[31].mxu0  ;;  %889 = vmatmul.mubr.msk.f32.gmra.mrb[28].mxu1 %vm356_vm2, %v334_v33 }
 0x118   :  { %891 = vmatprep.mubr.msk.f32.mxu1 %vm934_vm0, %v935_v3 }
 0x119   :  { %v335_v38 = vmax.f32 %v272_v35, 0.0 }
 0x11a   :  { %v276_v39 = vpop.f32.mrb[32].mxu0 }
 0x11b   :  { %v277_v40 = vadd.f32 %v1139_v36, %v276_v39  ;;  %v813_v41 = vpop.f32.mrb[33].mxu0  ;;  %892 = vmatmul.mubr.msk.f32.gmra.mrb[30].mxu1 %vm356_vm2, %v335_v38 }
 0x11c   :  { %894 = vmatprep.mubr.msk.f32.mxu1 %vm934_vm0, %v935_v3 }
 0x11d   :  { %v336_v42 = vmax.f32 %v277_v40, 0.0 }
 0x11e   :  { %v281_v43 = vpop.f32.mrb[34].mxu0 }
 0x11f   :  { %v282_v44 = vadd.f32 %v1139_v36, %v281_v43  ;;  %v816_v45 = vpop.f32.mrb[35].mxu0  ;;  %895 = vmatmul.mubr.msk.f32.gmra.mrb[32].mxu1 %vm356_vm2, %v336_v42 }
 0x120   :  { %897 = vmatprep.mubr.msk.f32.mxu1 %vm934_vm0, %v935_v3 }
 0x121   :  { %v337_v46 = vmax.f32 %v282_v44, 0.0 }
 0x122   :  { %v286_v47 = vpop.f32.mrb[36].mxu0 }
 0x123   :  { %v287_v48 = vadd.f32 %v1139_v36, %v286_v47  ;;  %v819_v49 = vpop.f32.mrb[37].mxu0  ;;  %898 = vmatmul.mubr.msk.f32.gmra.mrb[34].mxu1 %vm356_vm2, %v337_v46 }
 0x124   :  { %900 = vmatprep.mubr.msk.f32.mxu1 %vm934_vm0, %v935_v3 }
 0x125   :  { %v338_v50 = vmax.f32 %v287_v48, 0.0 }
 0x126   :  { %v291_v51 = vpop.f32.mrb[38].mxu0 }
 0x127   :  { %v292_v52 = vadd.f32 %v1139_v36, %v291_v51  ;;  %v822_v53 = vpop.f32.mrb[39].mxu0  ;;  %901 = vmatmul.mubr.msk.f32.gmra.mrb[36].mxu1 %vm356_vm2, %v338_v50 }
 0x128   :  { %903 = vmatprep.mubr.msk.f32.mxu1 %vm934_vm0, %v935_v3 }
 0x129   :  { %v339_v54 = vmax.f32 %v292_v52, 0.0 }
 0x12a   :  { %v296_v55 = vpop.f32.mrb[40].mxu0 }
 0x12b   :  { %v297_v56 = vadd.f32 %v1139_v36, %v296_v55  ;;  %v825_v57 = vpop.f32.mrb[41].mxu0  ;;  %904 = vmatmul.mubr.msk.f32.gmra.mrb[38].mxu1 %vm356_vm2, %v339_v54 }
 0x12c   :  { %906 = vmatprep.mubr.msk.f32.mxu1 %vm934_vm0, %v935_v3 }
 0x12d   :  { %v340_v58 = vmax.f32 %v297_v56, 0.0 }
 0x12e   :  { %v301_v59 = vpop.f32.mrb[42].mxu0 }
 0x12f   :  { %v302_v60 = vadd.f32 %v1139_v36, %v301_v59  ;;  %v828_v61 = vpop.f32.mrb[43].mxu0  ;;  %907 = vmatmul.mubr.msk.f32.gmra.mrb[40].mxu1 %vm356_vm2, %v340_v58 }
 0x130   :  { %909 = vmatprep.mubr.msk.f32.mxu1 %vm934_vm0, %v935_v3 }
 0x131   :  { %v341_v62 = vmax.f32 %v302_v60, 0.0 }
 0x132   :  { %v306_v63 = vpop.f32.mrb[44].mxu0 }
 0x133   :  { %v307_v0 = vadd.f32 %v1139_v36, %v306_v63  ;;  %v831_v1 = vpop.f32.mrb[45].mxu0  ;;  %910 = vmatmul.mubr.msk.f32.gmra.mrb[42].mxu1 %vm356_vm2, %v341_v62 }
 0x134   :  { %912 = vmatprep.mubr.msk.f32.mxu1 %vm934_vm0, %v935_v3 }
 0x135   :  { %v342_v2 = vmax.f32 %v307_v0, 0.0 }
 0x136   :  { %v311_v4 = vpop.f32.mrb[46].mxu0 }
 0x137   :  { %v312_v5 = vadd.f32 %v1139_v36, %v311_v4  ;;  %v834_v6 = vpop.f32.mrb[47].mxu0  ;;  %913 = vmatmul.mubr.msk.f32.gmra.mrb[44].mxu1 %vm356_vm2, %v342_v2 }
 0x138   :  { %915 = vmatprep.mubr.msk.f32.mxu1 %vm934_vm0, %v935_v3 }
 0x139   :  { %v343_v7 = vmax.f32 %v312_v5, 0.0 }
 0x13a   :  { %v316_v8 = vpop.f32.mrb[48].mxu0 }
 0x13b   :  { %v317_v9 = vadd.f32 %v1139_v36, %v316_v8  ;;  %v837_v10 = vpop.f32.mrb[49].mxu0  ;;  %916 = vmatmul.mubr.msk.f32.gmra.mrb[46].mxu1 %vm356_vm2, %v343_v7 }
 0x13c   :  { %918 = vmatprep.mubr.msk.f32.mxu1 %vm934_vm0, %v935_v3 }
 0x13d   :  { %v344_v11 = vmax.f32 %v317_v9, 0.0 }
 0x13f   :  { %919 = vmatmul.mubr.msk.f32.gmra.mrb[48].mxu1 %vm356_vm2, %v344_v11 }
 0x1b2   :  { %v498_v13 = vpop.f32.mrb[0].mxu1 }
 0x1b3   :  { %v499_v14 = vadd.f32 %v1242_v12, %v498_v13  ;;  %v848_v15 = vpop.f32.mrb[1].mxu1 }
 0x1b5   :  { %622 = vst [vmem:[%s1349_s5] sm:$0xff] %v499_v14 }
 0x1b6   :  { %v503_v36 = vpop.f32.mrb[2].mxu1 }
 0x1b7   :  { %v504_v16 = vadd.f32 %v1242_v12, %v503_v36  ;;  %v851_v3 = vpop.f32.mrb[3].mxu1 }
 0x1b9   :  { %623 = vst [vmem:[%s1349_s5 + $0x8] sm:$0xff] %v504_v16 }
 0x1ba   :  { %v508_v17 = vpop.f32.mrb[4].mxu1 }
 0x1bb   :  { %v509_v18 = vadd.f32 %v1242_v12, %v508_v17  ;;  %v854_v19 = vpop.f32.mrb[5].mxu1 }
 0x1bd   :  { %624 = vst [vmem:[%s1349_s5 + $0x10] sm:$0xff] %v509_v18 }
 0x1be   :  { %v513_v20 = vpop.f32.mrb[6].mxu1 }
 0x1bf   :  { %v514_v21 = vadd.f32 %v1242_v12, %v513_v20  ;;  %v857_v22 = vpop.f32.mrb[7].mxu1 }
 0x1c1   :  { %625 = vst [vmem:[%s1349_s5 + $0x18] sm:$0xff] %v514_v21 }
 0x1c2   :  { %v518_v23 = vpop.f32.mrb[8].mxu1 }
 0x1c3   :  { %v519_v24 = vadd.f32 %v1242_v12, %v518_v23  ;;  %v860_v25 = vpop.f32.mrb[9].mxu1 }
 0x1c5   :  { %626 = vst [vmem:[%s1349_s5 + $0x20] sm:$0xff] %v519_v24 }
 0x1c6   :  { %v523_v26 = vpop.f32.mrb[10].mxu1 }
 0x1c7   :  { %v524_v27 = vadd.f32 %v1242_v12, %v523_v26  ;;  %v863_v28 = vpop.f32.mrb[11].mxu1 }
 0x1c9   :  { %627 = vst [vmem:[%s1349_s5 + $0x28] sm:$0xff] %v524_v27 }
 0x1ca   :  { %v528_v29 = vpop.f32.mrb[12].mxu1 }
 0x1cb   :  { %v529_v30 = vadd.f32 %v1242_v12, %v528_v29  ;;  %v866_v31 = vpop.f32.mrb[13].mxu1 }
 0x1cd   :  { %628 = vst [vmem:[%s1349_s5 + $0x30] sm:$0xff] %v529_v30 }
 0x1ce   :  { %v533_v32 = vpop.f32.mrb[14].mxu1 }
 0x1cf   :  { %v534_v33 = vadd.f32 %v1242_v12, %v533_v32  ;;  %v869_v34 = vpop.f32.mrb[15].mxu1 }
 0x1d1   :  { %629 = vst [vmem:[%s1349_s5 + $0x38] sm:$0xff] %v534_v33 }
 0x1d2   :  { %v538_v35 = vpop.f32.mrb[16].mxu1 }
 0x1d3   :  { %v539_v37 = vadd.f32 %v1242_v12, %v538_v35  ;;  %v872_v38 = vpop.f32.mrb[17].mxu1 }
 0x1d5   :  { %630 = vst [vmem:[%s1349_s5 + $0x40] sm:$0xff] %v539_v37 }
 0x1d6   :  { %v543_v39 = vpop.f32.mrb[18].mxu1 }
 0x1d7   :  { %v544_v40 = vadd.f32 %v1242_v12, %v543_v39  ;;  %v875_v41 = vpop.f32.mrb[19].mxu1 }
 0x1d9   :  { %631 = vst [vmem:[%s1349_s5 + $0x48] sm:$0xff] %v544_v40 }
 0x1da   :  { %v548_v42 = vpop.f32.mrb[20].mxu1 }
 0x1db   :  { %v549_v43 = vadd.f32 %v1242_v12, %v548_v42  ;;  %v878_v44 = vpop.f32.mrb[21].mxu1 }
 0x1dd   :  { %632 = vst [vmem:[%s1349_s5 + $0x50] sm:$0xff] %v549_v43 }
 0x1de   :  { %v553_v45 = vpop.f32.mrb[22].mxu1 }
 0x1df   :  { %v554_v46 = vadd.f32 %v1242_v12, %v553_v45  ;;  %v881_v47 = vpop.f32.mrb[23].mxu1 }
 0x1e1   :  { %633 = vst [vmem:[%s1349_s5 + $0x58] sm:$0xff] %v554_v46 }
 0x1e2   :  { %v558_v48 = vpop.f32.mrb[24].mxu1 }
 0x1e3   :  { %v559_v49 = vadd.f32 %v1242_v12, %v558_v48  ;;  %v884_v50 = vpop.f32.mrb[25].mxu1 }
 0x1e5   :  { %634 = vst [vmem:[%s1349_s5 + $0x60] sm:$0xff] %v559_v49 }
 0x1e6   :  { %v563_v51 = vpop.f32.mrb[26].mxu1 }
 0x1e7   :  { %v564_v52 = vadd.f32 %v1242_v12, %v563_v51  ;;  %v887_v53 = vpop.f32.mrb[27].mxu1 }
 0x1e9   :  { %635 = vst [vmem:[%s1349_s5 + $0x68] sm:$0xff] %v564_v52 }
 0x1ea   :  { %v568_v54 = vpop.f32.mrb[28].mxu1 }
 0x1eb   :  { %v569_v55 = vadd.f32 %v1242_v12, %v568_v54  ;;  %v890_v56 = vpop.f32.mrb[29].mxu1 }
 0x1ed   :  { %636 = vst [vmem:[%s1349_s5 + $0x70] sm:$0xff] %v569_v55 }
 0x1ee   :  { %v573_v57 = vpop.f32.mrb[30].mxu1 }
 0x1ef   :  { %v574_v58 = vadd.f32 %v1242_v12, %v573_v57  ;;  %v893_v59 = vpop.f32.mrb[31].mxu1 }
 0x1f1   :  { %637 = vst [vmem:[%s1349_s5 + $0x78] sm:$0xff] %v574_v58 }
 0x1f2   :  { %v578_v60 = vpop.f32.mrb[32].mxu1 }
 0x1f3   :  { %v579_v61 = vadd.f32 %v1242_v12, %v578_v60  ;;  %v896_v62 = vpop.f32.mrb[33].mxu1 }
 0x1f5   :  { %638 = vst [vmem:[%s1349_s5 + $0x80] sm:$0xff] %v579_v61 }
 0x1f6   :  { %v583_v63 = vpop.f32.mrb[34].mxu1 }
 0x1f7   :  { %v584_v0 = vadd.f32 %v1242_v12, %v583_v63  ;;  %v899_v1 = vpop.f32.mrb[35].mxu1 }
 0x1f9   :  { %639 = vst [vmem:[%s1349_s5 + $0x88] sm:$0xff] %v584_v0 }
 0x1fa   :  { %v588_v2 = vpop.f32.mrb[36].mxu1 }
 0x1fb   :  { %v589_v4 = vadd.f32 %v1242_v12, %v588_v2  ;;  %v902_v5 = vpop.f32.mrb[37].mxu1 }
 0x1fd   :  { %640 = vst [vmem:[%s1349_s5 + $0x90] sm:$0xff] %v589_v4 }
 0x1fe   :  { %v593_v6 = vpop.f32.mrb[38].mxu1 }
 0x1ff   :  { %v594_v7 = vadd.f32 %v1242_v12, %v593_v6  ;;  %v905_v8 = vpop.f32.mrb[39].mxu1 }
 0x201   :  { %641 = vst [vmem:[%s1349_s5 + $0x98] sm:$0xff] %v594_v7 }
 0x202   :  { %v598_v9 = vpop.f32.mrb[40].mxu1 }
 0x203   :  { %v599_v10 = vadd.f32 %v1242_v12, %v598_v9  ;;  %v908_v11 = vpop.f32.mrb[41].mxu1 }
 0x205   :  { %642 = vst [vmem:[%s1349_s5 + $0xa0] sm:$0xff] %v599_v10 }
 0x206   :  { %v603_v13 = vpop.f32.mrb[42].mxu1 }
 0x207   :  { %v604_v14 = vadd.f32 %v1242_v12, %v603_v13  ;;  %v911_v15 = vpop.f32.mrb[43].mxu1 }
 0x209   :  { %643 = vst [vmem:[%s1349_s5 + $0xa8] sm:$0xff] %v604_v14 }
 0x20a   :  { %v608_v36 = vpop.f32.mrb[44].mxu1 }
 0x20b   :  { %v609_v16 = vadd.f32 %v1242_v12, %v608_v36  ;;  %v914_v3 = vpop.f32.mrb[45].mxu1 }
 0x20d   :  { %644 = vst [vmem:[%s1349_s5 + $0xb0] sm:$0xff] %v609_v16 }
 0x20e   :  { %v613_v17 = vpop.f32.mrb[46].mxu1 }
 0x20f   :  { %v614_v18 = vadd.f32 %v1242_v12, %v613_v17  ;;  %v917_v19 = vpop.f32.mrb[47].mxu1 }
 0x211   :  { %645 = vst [vmem:[%s1349_s5 + $0xb8] sm:$0xff] %v614_v18 }
 0x212   :  { %v618_v20 = vpop.f32.mrb[48].mxu1 }
 0x213   :  { %v619_v21 = vadd.f32 %v1242_v12, %v618_v20  ;;  %v920_v22 = vpop.f32.mrb[49].mxu1 }
 0x215   :  { %646 = vst [vmem:[%s1349_s5 + $0xc0] sm:$0xff] %v619_v21 }

</bundles_post_ra>
